<compile_context>
chip_gen: v6e
topology: v6e:2x2x1
jax: 0.10.0
libtpu: 0.0.40
codegen_flags: <defaults>
</compile_context>

<pallas_src>
import numpy as np
import jax
import jax.numpy as jnp
from jax.experimental import pallas as pl
from jax.experimental.pallas import tpu as pltpu

# ---- model configuration (small, consistent with the module) ----------------
INPUT_SIZE = 32      # == LSTM hidden size == fch output size (H)
HIDDEN_SIZE = 16     # h_in feature dim (fch input size)
TARGET_SIZE = 8      # decode steps (T)
NUM_LSTM_LAYERS = 1  # reference forward only valid for 1 layer
BATCH = 4


# ---- Pallas kernel: whole decode loop, state carried in vregs ----------------
def lstm_decoder_kernel(hin_ref, wfch_ref, gconst_ref, whh_ref, misc_ref, out_ref):
    H = wfch_ref.shape[1]
    T = gconst_ref.shape[0]

    # Hoist loop-invariant small operands once.
    b_fch = misc_ref[0:1, :]           # (1, H)
    w_out = misc_ref[1:2, :]           # (1, H)
    b_out = misc_ref[2:3, 0:1]         # (1, 1)
    w_hh0 = whh_ref[0]                 # (H, 4H)  unfolded W_hh^T   (step 0)
    w_hhf = whh_ref[1]                 # (H, 4H)  folded   W_hh^T'  (steps >= 1)

    # h0 = c0 = fch(h_in)   (same Linear applied to both, as in the PyTorch code)
    h = jnp.dot(hin_ref[...], wfch_ref[...],
                preferred_element_type=jnp.float32) + b_fch
    c = h

    ys = []
    for t in range(T):                 # fully unrolled; all indexing static
        w = w_hh0 if t == 0 else w_hhf
        gates = jnp.dot(h, w, preferred_element_type=jnp.float32) + gconst_ref[t]
        sig = jax.nn.sigmoid(gates)    # one EUP push over the whole (B, 4H) vreg
        tnh = jnp.tanh(gates)          # one EUP push
        i_g = sig[:, 0:H]
        f_g = sig[:, H:2 * H]
        g_g = tnh[:, 2 * H:3 * H]
        o_g = sig[:, 3 * H:4 * H]
        c = f_g * c + i_g * g_g
        h = o_g * jnp.tanh(c)
        # Output projection: no longer feeds back -> off the serial critical path.
        ys.append(jnp.sum(h * w_out, axis=-1, keepdims=True) + b_out)   # (B, 1)

    # Single lane-dense store in the layout the caller wants (batch-major).
    out_ref[...] = jnp.concatenate(ys, axis=-1)                         # (B, T)


# ---- wrapper -----------------------------------------------------------------
def lstm_decoder_forward(ct, z, h_in, params):
    B = ct.shape[0]
    T = z.shape[1]

    ct = ct.astype(jnp.float32)
    z = z.astype(jnp.float32)
    h_in = h_in.astype(jnp.float32)

    w_ih = params["w_ih_t"]            # (1, 4H)
    b_g = params["b_gates"]            # (1, 4H)
    b_out = params["b_out"]            # (1, 1)

    # Precompute per-step additive gate constants (time-major), folding ct, z,
    # w_ih, the combined LSTM bias, and (for t>=1) b_out from the fed-back output.
    x0 = ct + z[:, 0, :]                                   # (B, 1)    step 0
    xr = z[:, 1:, 0] + b_out[0, 0]                         # (B, T-1)  steps 1..T-1
    x_pre = jnp.concatenate([x0, xr], axis=1).T            # (T, B)
    gate_const = x_pre[:, :, None] * w_ih[None] + b_g[None]  # (T, B, 4H)

    out2d = pl.pallas_call(
        lstm_decoder_kernel,
        out_shape=jax.ShapeDtypeStruct((B, T), jnp.float32),
        in_specs=[pl.BlockSpec(memory_space=pltpu.MemorySpace.VMEM)] * 5,
        out_specs=pl.BlockSpec(memory_space=pltpu.MemorySpace.VMEM),
        # Note: if batch grows, add a leading grid axis over B with
        # dimension_semantics=("parallel",) to use both v7x TensorCores.
    )(h_in, params["w_fch_t"], gate_const, params["whh_pair"], params["misc"])

    return out2d[:, :, None]                               # (B, T, 1)


# ---- deterministic parameter init (PyTorch-style uniform fan-in init) -------
def init_params(key, input_size, hidden_size):
    H = input_size
    ks = jax.random.split(key, 8)
    kf = 1.0 / np.sqrt(hidden_size)    # Linear(hidden_size -> input_size)
    kl = 1.0 / np.sqrt(H)              # LSTM / Linear(input_size -> 1)

    w_fch = jax.random.uniform(ks[0], (H, hidden_size), jnp.float32, -kf, kf)
    b_fch = jax.random.uniform(ks[1], (H,), jnp.float32, -kf, kf)
    w_ih = jax.random.uniform(ks[2], (4 * H, 1), jnp.float32, -kl, kl)
    w_hh = jax.random.uniform(ks[3], (4 * H, H), jnp.float32, -kl, kl)
    b_ih = jax.random.uniform(ks[4], (4 * H,), jnp.float32, -kl, kl)
    b_hh = jax.random.uniform(ks[5], (4 * H,), jnp.float32, -kl, kl)
    w_out = jax.random.uniform(ks[6], (1, H), jnp.float32, -kl, kl)
    b_out = jax.random.uniform(ks[7], (1, 1), jnp.float32, -kl, kl)

    w_fch_t = jnp.transpose(w_fch)                # (hidden_size, H)
    w_ih_t = jnp.transpose(w_ih)                  # (1, 4H)
    w_hh_t = jnp.transpose(w_hh)                  # (H, 4H)
    b_gates = (b_ih + b_hh)[None, :]              # (1, 4H) combined LSTM bias

    # Fold the output projection into the recurrent weight (exact rewrite).
    w_hh_fold = w_hh_t + jnp.transpose(w_out) @ w_ih_t      # (H, 4H)
    whh_pair = jnp.stack([w_hh_t, w_hh_fold], axis=0)       # (2, H, 4H)

    # Pack tiny operands into one VMEM input: [b_fch ; w_out ; b_out (bcast)].
    misc = jnp.stack([b_fch, w_out[0], jnp.full((H,), b_out[0, 0])], axis=0)

    return {
        "w_fch_t": w_fch_t,
        "b_fch": b_fch[None, :],
        "w_ih_t": w_ih_t,
        "w_hh_t": w_hh_t,
        "b_gates": b_gates,
        "w_out": w_out,
        "b_out": b_out,
        "whh_pair": whh_pair,
        "misc": misc,
    }


# ---- pure-JAX reference (mirrors the PyTorch forward exactly, unfolded) ------
def reference_forward(ct, z, h_in, p):
    H = p["w_hh_t"].shape[0]
    h = h_in @ p["w_fch_t"] + p["b_fch"]
    c = h
    x = ct
    outs = []
    for di in range(z.shape[1]):
        xi = x + z[:, di, :]
        gates = xi * p["w_ih_t"] + h @ p["w_hh_t"] + p["b_gates"]
        i = jax.nn.sigmoid(gates[:, :H])
        f = jax.nn.sigmoid(gates[:, H:2 * H])
        g = jnp.tanh(gates[:, 2 * H:3 * H])
        o = jax.nn.sigmoid(gates[:, 3 * H:])
        c = f * c + i * g
        h = o * jnp.tanh(c)
        y = jnp.sum(h * p["w_out"], axis=-1, keepdims=True) + p["b_out"]
        outs.append(y)
        x = y
    return jnp.stack(outs, axis=1)                 # (B, T, 1)


if __name__ == "__main__":
    key = jax.random.PRNGKey(0)
    k_ct, k_z, k_h, k_p = jax.random.split(key, 4)

    ct = jax.random.normal(k_ct, (BATCH, 1), jnp.float32)
    z = jax.random.normal(k_z, (BATCH, TARGET_SIZE, 1), jnp.float32)
    h_in = jax.random.normal(k_h, (BATCH, HIDDEN_SIZE), jnp.float32)
    params = init_params(k_p, INPUT_SIZE, HIDDEN_SIZE)

    out = lstm_decoder_forward(ct, z, h_in, params)
    jax.block_until_ready(out)

    ref = reference_forward(ct, z, h_in, params)
    assert out.shape == (BATCH, TARGET_SIZE, 1)
    np.testing.assert_allclose(np.asarray(out), np.asarray(ref),
                               rtol=1e-4, atol=1e-4)
    print("KERNEL_OK")
</pallas_src>

<mosaic_0001>
module attributes {stable_mosaic.version = 11 : i64} {
  func.func @lstm_decoder_kernel(%arg0: memref<4x16xf32, #tpu.memory_space<vmem>>, %arg1: memref<16x32xf32, #tpu.memory_space<vmem>>, %arg2: memref<8x4x128xf32, #tpu.memory_space<vmem>>, %arg3: memref<2x32x128xf32, #tpu.memory_space<vmem>>, %arg4: memref<3x32xf32, #tpu.memory_space<vmem>>, %arg5: memref<4x8xf32, #tpu.memory_space<vmem>>) attributes {dimension_semantics = [], scalar_prefetch = 0 : i64, scratch_operands = 0 : i64, tpu.core_type = #tpu.core_type<tc>} {
    %c0 = arith.constant 0 : index
    %c0_0 = arith.constant 0 : index
    %0 = vector.load %arg4[%c0, %c0_0] : memref<3x32xf32, #tpu.memory_space<vmem>>, vector<1x32xf32>
    %c1 = arith.constant 1 : index
    %c0_1 = arith.constant 0 : index
    %1 = vector.load %arg4[%c1, %c0_1] : memref<3x32xf32, #tpu.memory_space<vmem>>, vector<1x32xf32>
    %c2 = arith.constant 2 : index
    %c0_2 = arith.constant 0 : index
    %2 = vector.load %arg4[%c2, %c0_2] : memref<3x32xf32, #tpu.memory_space<vmem>>, vector<1x1xf32>
    %c0_3 = arith.constant 0 : index
    %c0_4 = arith.constant 0 : index
    %c0_5 = arith.constant 0 : index
    %3 = vector.load %arg3[%c0_3, %c0_4, %c0_5] : memref<2x32x128xf32, #tpu.memory_space<vmem>>, vector<1x32x128xf32>
    %4 = vector.shape_cast %3 : vector<1x32x128xf32> to vector<32x128xf32>
    %c1_6 = arith.constant 1 : index
    %c0_7 = arith.constant 0 : index
    %c0_8 = arith.constant 0 : index
    %5 = vector.load %arg3[%c1_6, %c0_7, %c0_8] : memref<2x32x128xf32, #tpu.memory_space<vmem>>, vector<1x32x128xf32>
    %6 = vector.shape_cast %5 : vector<1x32x128xf32> to vector<32x128xf32>
    %c0_9 = arith.constant 0 : index
    %c0_10 = arith.constant 0 : index
    %7 = vector.load %arg0[%c0_9, %c0_10] : memref<4x16xf32, #tpu.memory_space<vmem>>, vector<4x16xf32>
    %c0_11 = arith.constant 0 : index
    %c0_12 = arith.constant 0 : index
    %8 = vector.load %arg1[%c0_11, %c0_12] : memref<16x32xf32, #tpu.memory_space<vmem>>, vector<16x32xf32>
    %cst = arith.constant dense<0.000000e+00> : vector<4x32xf32>
    %9 = tpu.matmul %7, %8, %cst {dimension_numbers = #tpu.dot_dimension_numbers<[1], [0], [0], [1], [0, 0, 1, 1], [], []>} : vector<4x16xf32>, vector<16x32xf32>, vector<4x32xf32> -> vector<4x32xf32>
    %10 = vector.broadcast %0 : vector<1x32xf32> to vector<4x32xf32>
    %11 = arith.addf %9, %10 : vector<4x32xf32>
    %cst_13 = arith.constant dense<0.000000e+00> : vector<4x128xf32>
    %12 = tpu.matmul %11, %4, %cst_13 {dimension_numbers = #tpu.dot_dimension_numbers<[1], [0], [0], [1], [0, 0, 1, 1], [], []>} : vector<4x32xf32>, vector<32x128xf32>, vector<4x128xf32> -> vector<4x128xf32>
    %c0_14 = arith.constant 0 : index
    %c0_15 = arith.constant 0 : index
    %c0_16 = arith.constant 0 : index
    %13 = vector.load %arg2[%c0_14, %c0_15, %c0_16] : memref<8x4x128xf32, #tpu.memory_space<vmem>>, vector<1x4x128xf32>
    %14 = vector.shape_cast %13 : vector<1x4x128xf32> to vector<4x128xf32>
    %15 = arith.addf %12, %14 : vector<4x128xf32>
    %16 = arith.negf %15 : vector<4x128xf32>
    %17 = math.exp %16 : vector<4x128xf32>
    %cst_17 = arith.constant 1.000000e+00 : f32
    %18 = vector.broadcast %cst_17 : f32 to vector<4x128xf32>
    %19 = arith.addf %18, %17 : vector<4x128xf32>
    %20 = arith.divf %18, %19 : vector<4x128xf32>
    %21 = math.tanh %15 : vector<4x128xf32>
    %22 = vector.extract_strided_slice %20 {offsets = [0, 0], sizes = [4, 32], strides = [1, 1]} : vector<4x128xf32> to vector<4x32xf32>
    %23 = vector.extract_strided_slice %20 {offsets = [0, 32], sizes = [4, 32], strides = [1, 1]} : vector<4x128xf32> to vector<4x32xf32>
    %24 = vector.extract_strided_slice %21 {offsets = [0, 64], sizes = [4, 32], strides = [1, 1]} : vector<4x128xf32> to vector<4x32xf32>
    %25 = vector.extract_strided_slice %20 {offsets = [0, 96], sizes = [4, 32], strides = [1, 1]} : vector<4x128xf32> to vector<4x32xf32>
    %26 = arith.mulf %23, %11 : vector<4x32xf32>
    %27 = arith.mulf %22, %24 : vector<4x32xf32>
    %28 = arith.addf %26, %27 : vector<4x32xf32>
    %29 = math.tanh %28 : vector<4x32xf32>
    %30 = arith.mulf %25, %29 : vector<4x32xf32>
    %31 = vector.broadcast %1 : vector<1x32xf32> to vector<4x32xf32>
    %32 = arith.mulf %30, %31 : vector<4x32xf32>
    %cst_18 = arith.constant dense<0.000000e+00> : vector<4xf32>
    %33 = vector.multi_reduction <add>, %32, %cst_18 [1] : vector<4x32xf32> to vector<4xf32>
    %34 = vector.shape_cast %33 : vector<4xf32> to vector<4x1xf32>
    %35 = vector.broadcast %2 : vector<1x1xf32> to vector<4x1xf32>
    %36 = arith.addf %34, %35 : vector<4x1xf32>
    %cst_19 = arith.constant dense<0.000000e+00> : vector<4x128xf32>
    %37 = tpu.matmul %30, %6, %cst_19 {dimension_numbers = #tpu.dot_dimension_numbers<[1], [0], [0], [1], [0, 0, 1, 1], [], []>} : vector<4x32xf32>, vector<32x128xf32>, vector<4x128xf32> -> vector<4x128xf32>
    %c1_20 = arith.constant 1 : index
    %c0_21 = arith.constant 0 : index
    %c0_22 = arith.constant 0 : index
    %38 = vector.load %arg2[%c1_20, %c0_21, %c0_22] : memref<8x4x128xf32, #tpu.memory_space<vmem>>, vector<1x4x128xf32>
    %39 = vector.shape_cast %38 : vector<1x4x128xf32> to vector<4x128xf32>
    %40 = arith.addf %37, %39 : vector<4x128xf32>
    %41 = arith.negf %40 : vector<4x128xf32>
    %42 = math.exp %41 : vector<4x128xf32>
    %cst_23 = arith.constant 1.000000e+00 : f32
    %43 = vector.broadcast %cst_23 : f32 to vector<4x128xf32>
    %44 = arith.addf %43, %42 : vector<4x128xf32>
    %45 = arith.divf %43, %44 : vector<4x128xf32>
    %46 = math.tanh %40 : vector<4x128xf32>
    %47 = vector.extract_strided_slice %45 {offsets = [0, 0], sizes = [4, 32], strides = [1, 1]} : vector<4x128xf32> to vector<4x32xf32>
    %48 = vector.extract_strided_slice %45 {offsets = [0, 32], sizes = [4, 32], strides = [1, 1]} : vector<4x128xf32> to vector<4x32xf32>
    %49 = vector.extract_strided_slice %46 {offsets = [0, 64], sizes = [4, 32], strides = [1, 1]} : vector<4x128xf32> to vector<4x32xf32>
    %50 = vector.extract_strided_slice %45 {offsets = [0, 96], sizes = [4, 32], strides = [1, 1]} : vector<4x128xf32> to vector<4x32xf32>
    %51 = arith.mulf %48, %28 : vector<4x32xf32>
    %52 = arith.mulf %47, %49 : vector<4x32xf32>
    %53 = arith.addf %51, %52 : vector<4x32xf32>
    %54 = math.tanh %53 : vector<4x32xf32>
    %55 = arith.mulf %50, %54 : vector<4x32xf32>
    %56 = vector.broadcast %1 : vector<1x32xf32> to vector<4x32xf32>
    %57 = arith.mulf %55, %56 : vector<4x32xf32>
    %cst_24 = arith.constant dense<0.000000e+00> : vector<4xf32>
    %58 = vector.multi_reduction <add>, %57, %cst_24 [1] : vector<4x32xf32> to vector<4xf32>
    %59 = vector.shape_cast %58 : vector<4xf32> to vector<4x1xf32>
    %60 = vector.broadcast %2 : vector<1x1xf32> to vector<4x1xf32>
    %61 = arith.addf %59, %60 : vector<4x1xf32>
    %cst_25 = arith.constant dense<0.000000e+00> : vector<4x128xf32>
    %62 = tpu.matmul %55, %6, %cst_25 {dimension_numbers = #tpu.dot_dimension_numbers<[1], [0], [0], [1], [0, 0, 1, 1], [], []>} : vector<4x32xf32>, vector<32x128xf32>, vector<4x128xf32> -> vector<4x128xf32>
    %c2_26 = arith.constant 2 : index
    %c0_27 = arith.constant 0 : index
    %c0_28 = arith.constant 0 : index
    %63 = vector.load %arg2[%c2_26, %c0_27, %c0_28] : memref<8x4x128xf32, #tpu.memory_space<vmem>>, vector<1x4x128xf32>
    %64 = vector.shape_cast %63 : vector<1x4x128xf32> to vector<4x128xf32>
    %65 = arith.addf %62, %64 : vector<4x128xf32>
    %66 = arith.negf %65 : vector<4x128xf32>
    %67 = math.exp %66 : vector<4x128xf32>
    %cst_29 = arith.constant 1.000000e+00 : f32
    %68 = vector.broadcast %cst_29 : f32 to vector<4x128xf32>
    %69 = arith.addf %68, %67 : vector<4x128xf32>
    %70 = arith.divf %68, %69 : vector<4x128xf32>
    %71 = math.tanh %65 : vector<4x128xf32>
    %72 = vector.extract_strided_slice %70 {offsets = [0, 0], sizes = [4, 32], strides = [1, 1]} : vector<4x128xf32> to vector<4x32xf32>
    %73 = vector.extract_strided_slice %70 {offsets = [0, 32], sizes = [4, 32], strides = [1, 1]} : vector<4x128xf32> to vector<4x32xf32>
    %74 = vector.extract_strided_slice %71 {offsets = [0, 64], sizes = [4, 32], strides = [1, 1]} : vector<4x128xf32> to vector<4x32xf32>
    %75 = vector.extract_strided_slice %70 {offsets = [0, 96], sizes = [4, 32], strides = [1, 1]} : vector<4x128xf32> to vector<4x32xf32>
    %76 = arith.mulf %73, %53 : vector<4x32xf32>
    %77 = arith.mulf %72, %74 : vector<4x32xf32>
    %78 = arith.addf %76, %77 : vector<4x32xf32>
    %79 = math.tanh %78 : vector<4x32xf32>
    %80 = arith.mulf %75, %79 : vector<4x32xf32>
    %81 = vector.broadcast %1 : vector<1x32xf32> to vector<4x32xf32>
    %82 = arith.mulf %80, %81 : vector<4x32xf32>
    %cst_30 = arith.constant dense<0.000000e+00> : vector<4xf32>
    %83 = vector.multi_reduction <add>, %82, %cst_30 [1] : vector<4x32xf32> to vector<4xf32>
    %84 = vector.shape_cast %83 : vector<4xf32> to vector<4x1xf32>
    %85 = vector.broadcast %2 : vector<1x1xf32> to vector<4x1xf32>
    %86 = arith.addf %84, %85 : vector<4x1xf32>
    %cst_31 = arith.constant dense<0.000000e+00> : vector<4x128xf32>
    %87 = tpu.matmul %80, %6, %cst_31 {dimension_numbers = #tpu.dot_dimension_numbers<[1], [0], [0], [1], [0, 0, 1, 1], [], []>} : vector<4x32xf32>, vector<32x128xf32>, vector<4x128xf32> -> vector<4x128xf32>
    %c3 = arith.constant 3 : index
    %c0_32 = arith.constant 0 : index
    %c0_33 = arith.constant 0 : index
    %88 = vector.load %arg2[%c3, %c0_32, %c0_33] : memref<8x4x128xf32, #tpu.memory_space<vmem>>, vector<1x4x128xf32>
    %89 = vector.shape_cast %88 : vector<1x4x128xf32> to vector<4x128xf32>
    %90 = arith.addf %87, %89 : vector<4x128xf32>
    %91 = arith.negf %90 : vector<4x128xf32>
    %92 = math.exp %91 : vector<4x128xf32>
    %cst_34 = arith.constant 1.000000e+00 : f32
    %93 = vector.broadcast %cst_34 : f32 to vector<4x128xf32>
    %94 = arith.addf %93, %92 : vector<4x128xf32>
    %95 = arith.divf %93, %94 : vector<4x128xf32>
    %96 = math.tanh %90 : vector<4x128xf32>
    %97 = vector.extract_strided_slice %95 {offsets = [0, 0], sizes = [4, 32], strides = [1, 1]} : vector<4x128xf32> to vector<4x32xf32>
    %98 = vector.extract_strided_slice %95 {offsets = [0, 32], sizes = [4, 32], strides = [1, 1]} : vector<4x128xf32> to vector<4x32xf32>
    %99 = vector.extract_strided_slice %96 {offsets = [0, 64], sizes = [4, 32], strides = [1, 1]} : vector<4x128xf32> to vector<4x32xf32>
    %100 = vector.extract_strided_slice %95 {offsets = [0, 96], sizes = [4, 32], strides = [1, 1]} : vector<4x128xf32> to vector<4x32xf32>
    %101 = arith.mulf %98, %78 : vector<4x32xf32>
    %102 = arith.mulf %97, %99 : vector<4x32xf32>
    %103 = arith.addf %101, %102 : vector<4x32xf32>
    %104 = math.tanh %103 : vector<4x32xf32>
    %105 = arith.mulf %100, %104 : vector<4x32xf32>
    %106 = vector.broadcast %1 : vector<1x32xf32> to vector<4x32xf32>
    %107 = arith.mulf %105, %106 : vector<4x32xf32>
    %cst_35 = arith.constant dense<0.000000e+00> : vector<4xf32>
    %108 = vector.multi_reduction <add>, %107, %cst_35 [1] : vector<4x32xf32> to vector<4xf32>
    %109 = vector.shape_cast %108 : vector<4xf32> to vector<4x1xf32>
    %110 = vector.broadcast %2 : vector<1x1xf32> to vector<4x1xf32>
    %111 = arith.addf %109, %110 : vector<4x1xf32>
    %cst_36 = arith.constant dense<0.000000e+00> : vector<4x128xf32>
    %112 = tpu.matmul %105, %6, %cst_36 {dimension_numbers = #tpu.dot_dimension_numbers<[1], [0], [0], [1], [0, 0, 1, 1], [], []>} : vector<4x32xf32>, vector<32x128xf32>, vector<4x128xf32> -> vector<4x128xf32>
    %c4 = arith.constant 4 : index
    %c0_37 = arith.constant 0 : index
    %c0_38 = arith.constant 0 : index
    %113 = vector.load %arg2[%c4, %c0_37, %c0_38] : memref<8x4x128xf32, #tpu.memory_space<vmem>>, vector<1x4x128xf32>
    %114 = vector.shape_cast %113 : vector<1x4x128xf32> to vector<4x128xf32>
    %115 = arith.addf %112, %114 : vector<4x128xf32>
    %116 = arith.negf %115 : vector<4x128xf32>
    %117 = math.exp %116 : vector<4x128xf32>
    %cst_39 = arith.constant 1.000000e+00 : f32
    %118 = vector.broadcast %cst_39 : f32 to vector<4x128xf32>
    %119 = arith.addf %118, %117 : vector<4x128xf32>
    %120 = arith.divf %118, %119 : vector<4x128xf32>
    %121 = math.tanh %115 : vector<4x128xf32>
    %122 = vector.extract_strided_slice %120 {offsets = [0, 0], sizes = [4, 32], strides = [1, 1]} : vector<4x128xf32> to vector<4x32xf32>
    %123 = vector.extract_strided_slice %120 {offsets = [0, 32], sizes = [4, 32], strides = [1, 1]} : vector<4x128xf32> to vector<4x32xf32>
    %124 = vector.extract_strided_slice %121 {offsets = [0, 64], sizes = [4, 32], strides = [1, 1]} : vector<4x128xf32> to vector<4x32xf32>
    %125 = vector.extract_strided_slice %120 {offsets = [0, 96], sizes = [4, 32], strides = [1, 1]} : vector<4x128xf32> to vector<4x32xf32>
    %126 = arith.mulf %123, %103 : vector<4x32xf32>
    %127 = arith.mulf %122, %124 : vector<4x32xf32>
    %128 = arith.addf %126, %127 : vector<4x32xf32>
    %129 = math.tanh %128 : vector<4x32xf32>
    %130 = arith.mulf %125, %129 : vector<4x32xf32>
    %131 = vector.broadcast %1 : vector<1x32xf32> to vector<4x32xf32>
    %132 = arith.mulf %130, %131 : vector<4x32xf32>
    %cst_40 = arith.constant dense<0.000000e+00> : vector<4xf32>
    %133 = vector.multi_reduction <add>, %132, %cst_40 [1] : vector<4x32xf32> to vector<4xf32>
    %134 = vector.shape_cast %133 : vector<4xf32> to vector<4x1xf32>
    %135 = vector.broadcast %2 : vector<1x1xf32> to vector<4x1xf32>
    %136 = arith.addf %134, %135 : vector<4x1xf32>
    %cst_41 = arith.constant dense<0.000000e+00> : vector<4x128xf32>
    %137 = tpu.matmul %130, %6, %cst_41 {dimension_numbers = #tpu.dot_dimension_numbers<[1], [0], [0], [1], [0, 0, 1, 1], [], []>} : vector<4x32xf32>, vector<32x128xf32>, vector<4x128xf32> -> vector<4x128xf32>
    %c5 = arith.constant 5 : index
    %c0_42 = arith.constant 0 : index
    %c0_43 = arith.constant 0 : index
    %138 = vector.load %arg2[%c5, %c0_42, %c0_43] : memref<8x4x128xf32, #tpu.memory_space<vmem>>, vector<1x4x128xf32>
    %139 = vector.shape_cast %138 : vector<1x4x128xf32> to vector<4x128xf32>
    %140 = arith.addf %137, %139 : vector<4x128xf32>
    %141 = arith.negf %140 : vector<4x128xf32>
    %142 = math.exp %141 : vector<4x128xf32>
    %cst_44 = arith.constant 1.000000e+00 : f32
    %143 = vector.broadcast %cst_44 : f32 to vector<4x128xf32>
    %144 = arith.addf %143, %142 : vector<4x128xf32>
    %145 = arith.divf %143, %144 : vector<4x128xf32>
    %146 = math.tanh %140 : vector<4x128xf32>
    %147 = vector.extract_strided_slice %145 {offsets = [0, 0], sizes = [4, 32], strides = [1, 1]} : vector<4x128xf32> to vector<4x32xf32>
    %148 = vector.extract_strided_slice %145 {offsets = [0, 32], sizes = [4, 32], strides = [1, 1]} : vector<4x128xf32> to vector<4x32xf32>
    %149 = vector.extract_strided_slice %146 {offsets = [0, 64], sizes = [4, 32], strides = [1, 1]} : vector<4x128xf32> to vector<4x32xf32>
    %150 = vector.extract_strided_slice %145 {offsets = [0, 96], sizes = [4, 32], strides = [1, 1]} : vector<4x128xf32> to vector<4x32xf32>
    %151 = arith.mulf %148, %128 : vector<4x32xf32>
    %152 = arith.mulf %147, %149 : vector<4x32xf32>
    %153 = arith.addf %151, %152 : vector<4x32xf32>
    %154 = math.tanh %153 : vector<4x32xf32>
    %155 = arith.mulf %150, %154 : vector<4x32xf32>
    %156 = vector.broadcast %1 : vector<1x32xf32> to vector<4x32xf32>
    %157 = arith.mulf %155, %156 : vector<4x32xf32>
    %cst_45 = arith.constant dense<0.000000e+00> : vector<4xf32>
    %158 = vector.multi_reduction <add>, %157, %cst_45 [1] : vector<4x32xf32> to vector<4xf32>
    %159 = vector.shape_cast %158 : vector<4xf32> to vector<4x1xf32>
    %160 = vector.broadcast %2 : vector<1x1xf32> to vector<4x1xf32>
    %161 = arith.addf %159, %160 : vector<4x1xf32>
    %cst_46 = arith.constant dense<0.000000e+00> : vector<4x128xf32>
    %162 = tpu.matmul %155, %6, %cst_46 {dimension_numbers = #tpu.dot_dimension_numbers<[1], [0], [0], [1], [0, 0, 1, 1], [], []>} : vector<4x32xf32>, vector<32x128xf32>, vector<4x128xf32> -> vector<4x128xf32>
    %c6 = arith.constant 6 : index
    %c0_47 = arith.constant 0 : index
    %c0_48 = arith.constant 0 : index
    %163 = vector.load %arg2[%c6, %c0_47, %c0_48] : memref<8x4x128xf32, #tpu.memory_space<vmem>>, vector<1x4x128xf32>
    %164 = vector.shape_cast %163 : vector<1x4x128xf32> to vector<4x128xf32>
    %165 = arith.addf %162, %164 : vector<4x128xf32>
    %166 = arith.negf %165 : vector<4x128xf32>
    %167 = math.exp %166 : vector<4x128xf32>
    %cst_49 = arith.constant 1.000000e+00 : f32
    %168 = vector.broadcast %cst_49 : f32 to vector<4x128xf32>
    %169 = arith.addf %168, %167 : vector<4x128xf32>
    %170 = arith.divf %168, %169 : vector<4x128xf32>
    %171 = math.tanh %165 : vector<4x128xf32>
    %172 = vector.extract_strided_slice %170 {offsets = [0, 0], sizes = [4, 32], strides = [1, 1]} : vector<4x128xf32> to vector<4x32xf32>
    %173 = vector.extract_strided_slice %170 {offsets = [0, 32], sizes = [4, 32], strides = [1, 1]} : vector<4x128xf32> to vector<4x32xf32>
    %174 = vector.extract_strided_slice %171 {offsets = [0, 64], sizes = [4, 32], strides = [1, 1]} : vector<4x128xf32> to vector<4x32xf32>
    %175 = vector.extract_strided_slice %170 {offsets = [0, 96], sizes = [4, 32], strides = [1, 1]} : vector<4x128xf32> to vector<4x32xf32>
    %176 = arith.mulf %173, %153 : vector<4x32xf32>
    %177 = arith.mulf %172, %174 : vector<4x32xf32>
    %178 = arith.addf %176, %177 : vector<4x32xf32>
    %179 = math.tanh %178 : vector<4x32xf32>
    %180 = arith.mulf %175, %179 : vector<4x32xf32>
    %181 = vector.broadcast %1 : vector<1x32xf32> to vector<4x32xf32>
    %182 = arith.mulf %180, %181 : vector<4x32xf32>
    %cst_50 = arith.constant dense<0.000000e+00> : vector<4xf32>
    %183 = vector.multi_reduction <add>, %182, %cst_50 [1] : vector<4x32xf32> to vector<4xf32>
    %184 = vector.shape_cast %183 : vector<4xf32> to vector<4x1xf32>
    %185 = vector.broadcast %2 : vector<1x1xf32> to vector<4x1xf32>
    %186 = arith.addf %184, %185 : vector<4x1xf32>
    %cst_51 = arith.constant dense<0.000000e+00> : vector<4x128xf32>
    %187 = tpu.matmul %180, %6, %cst_51 {dimension_numbers = #tpu.dot_dimension_numbers<[1], [0], [0], [1], [0, 0, 1, 1], [], []>} : vector<4x32xf32>, vector<32x128xf32>, vector<4x128xf32> -> vector<4x128xf32>
    %c7 = arith.constant 7 : index
    %c0_52 = arith.constant 0 : index
    %c0_53 = arith.constant 0 : index
    %188 = vector.load %arg2[%c7, %c0_52, %c0_53] : memref<8x4x128xf32, #tpu.memory_space<vmem>>, vector<1x4x128xf32>
    %189 = vector.shape_cast %188 : vector<1x4x128xf32> to vector<4x128xf32>
    %190 = arith.addf %187, %189 : vector<4x128xf32>
    %191 = arith.negf %190 : vector<4x128xf32>
    %192 = math.exp %191 : vector<4x128xf32>
    %cst_54 = arith.constant 1.000000e+00 : f32
    %193 = vector.broadcast %cst_54 : f32 to vector<4x128xf32>
    %194 = arith.addf %193, %192 : vector<4x128xf32>
    %195 = arith.divf %193, %194 : vector<4x128xf32>
    %196 = math.tanh %190 : vector<4x128xf32>
    %197 = vector.extract_strided_slice %195 {offsets = [0, 0], sizes = [4, 32], strides = [1, 1]} : vector<4x128xf32> to vector<4x32xf32>
    %198 = vector.extract_strided_slice %195 {offsets = [0, 32], sizes = [4, 32], strides = [1, 1]} : vector<4x128xf32> to vector<4x32xf32>
    %199 = vector.extract_strided_slice %196 {offsets = [0, 64], sizes = [4, 32], strides = [1, 1]} : vector<4x128xf32> to vector<4x32xf32>
    %200 = vector.extract_strided_slice %195 {offsets = [0, 96], sizes = [4, 32], strides = [1, 1]} : vector<4x128xf32> to vector<4x32xf32>
    %201 = arith.mulf %198, %178 : vector<4x32xf32>
    %202 = arith.mulf %197, %199 : vector<4x32xf32>
    %203 = arith.addf %201, %202 : vector<4x32xf32>
    %204 = math.tanh %203 : vector<4x32xf32>
    %205 = arith.mulf %200, %204 : vector<4x32xf32>
    %206 = vector.broadcast %1 : vector<1x32xf32> to vector<4x32xf32>
    %207 = arith.mulf %205, %206 : vector<4x32xf32>
    %cst_55 = arith.constant dense<0.000000e+00> : vector<4xf32>
    %208 = vector.multi_reduction <add>, %207, %cst_55 [1] : vector<4x32xf32> to vector<4xf32>
    %209 = vector.shape_cast %208 : vector<4xf32> to vector<4x1xf32>
    %210 = vector.broadcast %2 : vector<1x1xf32> to vector<4x1xf32>
    %211 = arith.addf %209, %210 : vector<4x1xf32>
    %212 = tpu.concatenate %36, %61, %86, %111, %136, %161, %186, %211 in 1 : vector<4x1xf32>, vector<4x1xf32>, vector<4x1xf32>, vector<4x1xf32>, vector<4x1xf32>, vector<4x1xf32>, vector<4x1xf32>, vector<4x1xf32> -> vector<4x8xf32>
    %c0_56 = arith.constant 0 : index
    %c0_57 = arith.constant 0 : index
    %213 = vector.load %arg5[%c0_56, %c0_57] : memref<4x8xf32, #tpu.memory_space<vmem>>, vector<4x8xf32>
    tpu.vector_store %arg5[%c0_56, %c0_57], %212 {strides = array<i32>} : memref<4x8xf32, #tpu.memory_space<vmem>>, vector<4x8xf32>,
    return
  }
}

</mosaic_0001>

<bundles_post_ra>
// kernel: tpu_custom_call.1
= control target key start
LH: loop header
LB: loop body
LE: loop exit
PB: predicated region body
PF: predicated region fallthrough
CT: control target
= control target key end

     0   :  { %10 = vsyncpa [#allocation3], 0  ;;  %s1722_s0 = inlined_call_operand.hbm [shape: f32[4,16], index: 0, kind: input, shape index: {}]   ;;  %s1723_s1 = inlined_call_operand.hbm [shape: f32[16,32], index: 1, kind: input, shape index: {}]   ;;  %s1724_s2 = inlined_call_operand.hbm [shape: f32[8,4,128], index: 2, kind: input, shape index: {}]   ;;  %s1725_s3 = inlined_call_operand.hbm [shape: f32[2,32,128], index: 3, kind: input, shape index: {}]   ;;  %s1726_s4 = inlined_call_operand.vmem [shape: f32[3,32], index: 4, kind: input, shape index: {}]   ;;  %s1727_s5 = inlined_call_operand.hbm [shape: f32[4,8], index: 5, kind: output, shape index: {}]  }
   0x1   :  { %11 = vsyncpa [#allocation6], 0 }
   0x2   :  { %12 = vsyncpa [#allocation9], 0 }
   0x3   :  { %13 = vsyncpa [#allocation4], 0  ;;  %s1471_s18 = smov [#allocation5]  }
   0x4   :  { %s29_s19 = sshll.u32 %s1471_s18, 4  ;;  %s30_s19 = int_to_ptr.vmem [resolvable:$true] %s29_s19 }
   0x5   :  { %s1371_s20 = scalar_lea.vmem %s30_s19, 256  ;;  %p1376_p1 = scmp.lt.s32.totalorder %s30_s19, %s30_s19 }
   0x6   :  { %p1372_p0 = scmp.ne.s32.totalorder %s30_s19, %s1371_s20  ;;  %p1377_p2 = scmp.lt.s32.totalorder %s1371_s20, %s1371_s20 }
   0x8   :  { %p1378_p3 = por %p1377_p2, %p1376_p1 }
   0xa   :  { %p1379_p4 = pnand %p1378_p3, %p1372_p0 }
   0xc   :  { %1382 = shalt.err (!%p1379_p4)
}
   0xd   :  { %s1472_s21 = smov 128   ;;  %s1473_s22 = smov 8  }
   0xe   :  { %35 = dma.hbm_to_vmem [thread:$0]  %s1723_s1, 256, %s30_s19, [#allocation6], %s1472_s21, %s1472_s21, %s1473_s22  }
   0xf   :  { %s1474_s25 = smov [#allocation2]   ;;  %s1475_s27 = smov [#allocation7]  }
  0x10   :  { %s20_s26 = sshll.u32 %s1474_s25, 4  ;;  %s41_s28 = sshll.u32 %s1475_s27, 4  ;;  %s21_s26 = int_to_ptr.vmem [resolvable:$true] %s20_s26  ;;  %s42_s28 = int_to_ptr.vmem [resolvable:$true] %s41_s28 }
  0x11   :  { %s1391_s29 = scalar_lea.vmem %s21_s26, 64  ;;  %p1396_p6 = scmp.lt.s32.totalorder %s21_s26, %s21_s26 }
  0x12   :  { %p1392_p5 = scmp.ne.s32.totalorder %s21_s26, %s1391_s29  ;;  %p1397_p7 = scmp.lt.s32.totalorder %s1391_s29, %s1391_s29 }
  0x14   :  { %p1398_p8 = por %p1397_p7, %p1396_p6 }
  0x16   :  { %p1399_p9 = pnand %p1398_p8, %p1392_p5 }
  0x18   :  { %1402 = shalt.err (!%p1399_p9)
}
  0x19   :  { %23 = dma.hbm_to_vmem [thread:$0]  %s1722_s0, 64, %s21_s26, [#allocation3]  }
  0x1a   :  { %s1411_s7 = scalar_lea.vmem %s42_s28, 512  ;;  %p1416_p11 = scmp.lt.s32.totalorder %s42_s28, %s42_s28 }
  0x1b   :  { %p1412_p10 = scmp.ne.s32.totalorder %s42_s28, %s1411_s7  ;;  %p1417_p12 = scmp.lt.s32.totalorder %s1411_s7, %s1411_s7 }
  0x1d   :  { %p1418_p13 = por %p1417_p12, %p1416_p11 }
  0x1f   :  { %p1419_p0 = pnand %p1418_p13, %p1412_p10 }
  0x21   :  { %1422 = shalt.err (!%p1419_p0)
}
  0x22   :  { %s1476_s1 = smov 64   ;;  %s1477_s8 = smov 4  }
  0x23   :  { %47 = dma.hbm_to_vmem [thread:$0]  %s1724_s2, 512, %s42_s28, [#allocation6], %s1476_s1, %s1476_s1, %s1477_s8  }
  0x24   :  { %s1478_s11 = smov [#allocation8]  }
  0x25   :  { %s53_s12 = sshll.u32 %s1478_s11, 4  ;;  %s54_s12 = int_to_ptr.vmem [resolvable:$true] %s53_s12 }
  0x26   :  { %s1431_s0 = scalar_lea.vmem %s54_s12, 1024  ;;  %p1436_p2 = scmp.lt.s32.totalorder %s54_s12, %s54_s12 }
  0x27   :  { %p1432_p1 = scmp.ne.s32.totalorder %s54_s12, %s1431_s0  ;;  %p1437_p3 = scmp.lt.s32.totalorder %s1431_s0, %s1431_s0 }
  0x29   :  { %p1438_p4 = por %p1437_p3, %p1436_p2 }
  0x2b   :  { %p1439_p5 = pnand %p1438_p4, %p1432_p1 }
  0x2d   :  { %1442 = shalt.err (!%p1439_p5)
}
  0x2e   :  { %59 = dma.hbm_to_vmem [thread:$0]  %s1725_s3, 1024, %s54_s12, [#allocation9], %s1472_s21, %s1472_s21, %s1473_s22  }
  0x2f   :  { %1463 = dma.done.wait [#allocation3], 64  }
  0x30   :  { %1464 = vsyncadd [#allocation3], 4294967232 }
  0x31   :  { %1465 = dma.done.wait [#allocation6], 768  }
  0x32   :  { %1466 = vsyncadd [#allocation6], 4294966528 }
  0x33   :  { %1467 = dma.done.wait [#allocation9], 1024  }
  0x34   :  { %1468 = vsyncadd [#allocation9], 4294966272  ;;  %v1479_v0 = vmov 0.0   ;;  %vm1480_vm0 = vmmov 0   ;;  %v88_v1 = vld [vmem:[#allocation5 + $0x8] sm:$0xff]  ;;  %v87_v2 = vld [vmem:[#allocation5] sm:$0xff] }
  0x35   :  { %1185 = vmatprep.subr.mxu0 %v1479_v0  ;;  %1189 = vmatprep.mubr.msk.f32.mxu0 %vm1480_vm0, %v1479_v0  ;;  %v86_v3 = vld [vmem:[#allocation2] sm:$0xf]  ;;  %vm93_vm1 = vcmask 130048   ;;  %v80_v4 = vld [vmem:[#allocation8 + $0x18] sm:$0xff]  ;;  %v79_v5 = vld [vmem:[#allocation8 + $0x10] sm:$0xff]  ;;  %vm168_vm2 = vcmask 261120  }
  0x36   :  { %1192 = vmatprep.subr.mxu1 %v1479_v0  ;;  %1200 = vmatprep.mubr.msk.f32.mxu1 %vm1480_vm0, %v1479_v0  ;;  %v78_v6 = vld [vmem:[#allocation8 + $0x8] sm:$0xff]  ;;  %v77_v7 = vld [vmem:[#allocation8] sm:$0xff]  ;;  %s1481_s15 = smov 32   ;;  %v1564_v27 = vld [vmem:[#allocation8 + $0x38] sm:$0xff]  ;;  %s1482_s18 = smov 96   ;;  %vm282_vm3 = vcmask 257024  }
  0x37   :  { %1186 = vmatpush3.msra.mxu0 %v88_v1  ;;  %1193 = vmatpush3.msra.mxu1 %v80_v4  ;;  %v1122_v8 = vld [vmem:[%s1726_s4] ss:$0 sm:$0xff]  ;;  %v167_v12 = vld [vmem:[#allocation7] sm:$0xf]  ;;  %v1566_v28 = vld [vmem:[#allocation8 + $0x30] sm:$0xff]  ;;  %s1483_s21 = smov 1  }
  0x38   :  { %1187 = vmatprep.subr.mxu0 %v1479_v0  ;;  %1194 = vmatprep.subr.mxu1 %v1479_v0  ;;  %v1571_v29 = vld [vmem:[#allocation8 + $0x28] sm:$0xff]  ;;  %v1577_v30 = vld [vmem:[#allocation8 + $0x20] sm:$0xff]  ;;  %s1484_s22 = smov 2   ;;  %s1485_s23 = smov 3   ;;  %vm1089_vm4 = vcmask 7168   ;;  %vm1091_vm5 = vcmask 15360  }
  0x39   :  { %1188 = vmatpush3.msra.mxu0 %v87_v2  ;;  %1195 = vmatpush3.msra.mxu1 %v79_v5  ;;  %v292_v35 = vld [vmem:[#allocation7 + $0x4] sm:$0xf]  ;;  %v402_v53 = vld [vmem:[#allocation7 + $0x8] sm:$0xf]  ;;  %s1487_s24 = smov 6   ;;  %s1488_s25 = smov 7  }
  0x3a   :  { %1190 = vmatmul.mubr.msk.f32.vlgmr.msra.gmra.mxu0 %vm93_vm1, %v86_v3  ;;  %1196 = vmatprep.subr.mxu1 %v1479_v0  ;;  %vm1093_vm6 = vcmask 23552   ;;  %vm1095_vm7 = vcmask 31744   ;;  %vm1097_vm8 = vcmask 39936   ;;  %vm1099_vm9 = vcmask 48128   ;;  %s1489_s26 = smov [#allocation10]  }
  0x3b   :  { %1203 = vmatprep.subr.mxu0 %v1479_v0  ;;  %1211 = vmatprep.mubr.msk.f32.mxu0 %vm1480_vm0, %v1479_v0  ;;  %s1111_s27 = sshll.u32 %s1489_s26, 4  ;;  %vm1101_vm10 = vcmask 56320   ;;  %vm1103_vm11 = vcmask 60416   ;;  %s1112_s27 = int_to_ptr.vmem [resolvable:$true] %s1111_s27 }
  0x3c   :  { %1197 = vmatpush3.msra.mxu1 %v78_v6  ;;  %1204 = vmatpush3.msra.mxu0 %v1564_v27  ;;  %s1443_s28 = scalar_lea.vmem %s1112_s27, 64  ;;  %p1448_p7 = scmp.lt.s32.totalorder %s1112_s27, %s1112_s27 }
  0x3d   :  { %1198 = vmatprep.subr.mxu1 %v1479_v0  ;;  %1205 = vmatprep.subr.mxu0 %v1479_v0  ;;  %p1444_p6 = scmp.ne.s32.totalorder %s1112_s27, %s1443_s28  ;;  %p1449_p8 = scmp.lt.s32.totalorder %s1443_s28, %s1443_s28 }
  0x3e   :  { %1199 = vmatpush3.msra.mxu1 %v77_v7  ;;  %1206 = vmatpush3.msra.mxu0 %v1566_v28 }
  0x3f   :  { %1214 = vmatprep.subr.mxu1 %v1479_v0  ;;  %1207 = vmatprep.subr.mxu0 %v1479_v0  ;;  %p1450_p9 = por %p1449_p8, %p1448_p7 }
  0x40   :  { %1208 = vmatpush3.msra.mxu0 %v1571_v29 }
  0x41   :  { %1209 = vmatprep.subr.mxu0 %v1479_v0  ;;  %p1451_p10 = pnand %p1450_p9, %p1444_p6 }
  0x42   :  { %1210 = vmatpush3.msra.mxu0 %v1577_v30 }
  0x43   :  { %1225 = vmatprep.subr.mxu0 %v1479_v0 }
  0xfa   :  { %v163_v9 = vpop.f32.mrf.mxu0 }
  0xfb   :  { %v164_v10 = vadd.f32 %v1122_v8, %v163_v9  ;;  %v512_v8 = vld [vmem:[#allocation7 + $0xc] sm:$0xf] }
  0xfc   :  { %v1191_v11 = vpop.f32.mrf.mxu0 }
  0xfd   :  { %1201 = vmatmul.mubr.msk.f32.vlgmr.msra.gmra.mxu1 %vm168_vm2, %v164_v10 }
  0xfe   :  { %1222 = vmatprep.mubr.msk.f32.mxu1 %vm1480_vm0, %v1479_v0  ;;  %1215 = vmatpush3.msra.mxu1 %v1564_v27 }
  0xff   :  { %1216 = vmatprep.subr.mxu1 %v1479_v0 }
 0x100   :  { %1217 = vmatpush3.msra.mxu1 %v1566_v28 }
 0x101   :  { %1218 = vmatprep.subr.mxu1 %v1479_v0 }
 0x102   :  { %1219 = vmatpush3.msra.mxu1 %v1571_v29 }
 0x103   :  { %1220 = vmatprep.subr.mxu1 %v1479_v0 }
 0x104   :  { %1221 = vmatpush3.msra.mxu1 %v1577_v30 }
 0x105   :  { %1236 = vmatprep.subr.mxu1 %v1479_v0 }
 0x1bd   :  { %v238_v13 = vpop.f32.mrf.mxu1 }
 0x1be   :  { %v239_v14 = vadd.f32 %v238_v13, %v167_v12 }
 0x1bf   :  { %v1202_v15 = vpop.f32.mrf.mxu1 }
 0x1c0   :  { %1299 = vtanh.f32 %v239_v14  ;;  %v1125_v17 = vmul.f32 -1.442695, %v239_v14 }
 0x1c2   :  { %1301 = vpow2.f32 %v1125_v17 }
 0x1cd   :  { %v1300_v16 = vpop.eup %1299 }
 0x1ce   :  { %254 = vrot.lane.b32.xlu0 %v1300_v16, %s1476_s1 }
 0x1cf   :  { %v1302_v18 = vpop.eup %1301 }
 0x1d0   :  { %v245_v19 = vadd.f32 1.0, %v1302_v18 }
 0x1d2   :  { %249 = vrot.lane.b32.xlu0 %v164_v10, %s1481_s15  ;;  %1303 = vrcp.f32 %v245_v19 }
 0x1df   :  { %v1304_v20 = vpop.eup %1303 }
 0x240   :  { %v255_v21 = vpop.permute.xlu0 %254 }
 0x241   :  { %v257_v22 = vmul.f32 %v1304_v20, %v255_v21 }
 0x243   :  { %259 = vrot.lane.b32.xlu1 %v257_v22, %s1481_s15 }
 0x244   :  { %v250_v23 = vpop.permute.xlu0 %249 }
 0x245   :  { %v252_v24 = vmul.f32 %v1304_v20, %v250_v23 }
 0x2b5   :  { %v260_v25 = vpop.permute.xlu1 %259 }
 0x2b6   :  { %v262_v26 = vadd.f32 %v260_v25, %v252_v24 }
 0x2b8   :  { %1305 = vtanh.f32 %v262_v26 }
 0x2c5   :  { %v1306_v31 = vpop.eup %1305 }
 0x2c6   :  { %265 = vrot.lane.b32.xlu1 %v1306_v31, %s1476_s1 }
 0x338   :  { %v266_v32 = vpop.permute.xlu1 %265 }
 0x339   :  { %v1589_v33 = vmul.f32 %v1304_v20, %v266_v32 }
 0x33b   :  { %294 = vrot.lane.b32.xlu0 %v1589_v33, %s1481_s15 }
 0x3ad   :  { %v295_v34 = vpop.permute.xlu0 %294 }
 0x3ae   :  { %1212 = vmatmul.mubr.msk.f32.vlgmr.msra.gmra.mxu0 %vm168_vm2, %v295_v34 }
 0x3af   :  { %1226 = vmatpush3.msra.mxu0 %v1564_v27  ;;  %1233 = vmatprep.mubr.msk.f32.mxu0 %vm1480_vm0, %v1479_v0 }
 0x3b0   :  { %1227 = vmatprep.subr.mxu0 %v1479_v0 }
 0x3b1   :  { %1228 = vmatpush3.msra.mxu0 %v1566_v28 }
 0x3b2   :  { %1229 = vmatprep.subr.mxu0 %v1479_v0 }
 0x3b3   :  { %1230 = vmatpush3.msra.mxu0 %v1571_v29 }
 0x3b4   :  { %1231 = vmatprep.subr.mxu0 %v1479_v0 }
 0x3b5   :  { %1232 = vmatpush3.msra.mxu0 %v1577_v30 }
 0x3b6   :  { %1247 = vmatprep.subr.mxu0 %v1479_v0 }
 0x46e   :  { %v364_v36 = vpop.f32.mrf.mxu0 }
 0x46f   :  { %v365_v37 = vadd.f32 %v364_v36, %v292_v35 }
 0x470   :  { %v1213_v38 = vpop.f32.mrf.mxu0 }
 0x471   :  { %1307 = vtanh.f32 %v365_v37  ;;  %v1129_v40 = vmul.f32 -1.442695, %v365_v37 }
 0x473   :  { %1309 = vpow2.f32 %v1129_v40 }
 0x47e   :  { %v1308_v39 = vpop.eup %1307 }
 0x47f   :  { %377 = vrot.lane.b32.xlu1 %v1308_v39, %s1476_s1 }
 0x480   :  { %v1310_v41 = vpop.eup %1309 }
 0x481   :  { %v371_v42 = vadd.f32 1.0, %v1310_v41 }
 0x483   :  { %1311 = vrcp.f32 %v371_v42 }
 0x490   :  { %v1312_v43 = vpop.eup %1311 }
 0x491   :  { %v375_v46 = vmul.f32 %v1312_v43, %v262_v26  ;;  %v622_v26 = vld [vmem:[#allocation7 + $0x10] sm:$0xf] }
 0x4f1   :  { %v378_v44 = vpop.permute.xlu1 %377 }
 0x4f2   :  { %v380_v45 = vmul.f32 %v1312_v43, %v378_v44 }
 0x4f4   :  { %382 = vrot.lane.b32.xlu0 %v380_v45, %s1481_s15 }
 0x566   :  { %v383_v47 = vpop.permute.xlu0 %382 }
 0x567   :  { %v385_v48 = vadd.f32 %v383_v47, %v375_v46 }
 0x569   :  { %1313 = vtanh.f32 %v385_v48 }
 0x576   :  { %v1314_v49 = vpop.eup %1313 }
 0x577   :  { %388 = vrot.lane.b32.xlu1 %v1314_v49, %s1476_s1  ;;  %v732_v49 = vld [vmem:[#allocation7 + $0x14] sm:$0xf] }
 0x5e9   :  { %v389_v50 = vpop.permute.xlu1 %388 }
 0x5ea   :  { %v1607_v51 = vmul.f32 %v1312_v43, %v389_v50 }
 0x5ec   :  { %404 = vrot.lane.b32.xlu0 %v1607_v51, %s1481_s15 }
 0x65e   :  { %v405_v52 = vpop.permute.xlu0 %404 }
 0x65f   :  { %1223 = vmatmul.mubr.msk.f32.vlgmr.msra.gmra.mxu1 %vm168_vm2, %v405_v52 }
 0x660   :  { %1237 = vmatpush3.msra.mxu1 %v1564_v27  ;;  %1244 = vmatprep.mubr.msk.f32.mxu1 %vm1480_vm0, %v1479_v0 }
 0x661   :  { %1238 = vmatprep.subr.mxu1 %v1479_v0 }
 0x662   :  { %1239 = vmatpush3.msra.mxu1 %v1566_v28 }
 0x663   :  { %1240 = vmatprep.subr.mxu1 %v1479_v0 }
 0x664   :  { %1241 = vmatpush3.msra.mxu1 %v1571_v29 }
 0x665   :  { %1242 = vmatprep.subr.mxu1 %v1479_v0 }
 0x666   :  { %1243 = vmatpush3.msra.mxu1 %v1577_v30 }
 0x667   :  { %1258 = vmatprep.subr.mxu1 %v1479_v0 }
 0x71f   :  { %v474_v54 = vpop.f32.mrf.mxu1 }
 0x720   :  { %v475_v55 = vadd.f32 %v474_v54, %v402_v53 }
 0x721   :  { %v1224_v56 = vpop.f32.mrf.mxu1 }
 0x722   :  { %1315 = vtanh.f32 %v475_v55  ;;  %v1131_v58 = vmul.f32 -1.442695, %v475_v55 }
 0x724   :  { %1317 = vpow2.f32 %v1131_v58 }
 0x72f   :  { %v1316_v57 = vpop.eup %1315 }
 0x730   :  { %487 = vrot.lane.b32.xlu1 %v1316_v57, %s1476_s1 }
 0x731   :  { %v1318_v59 = vpop.eup %1317 }
 0x732   :  { %v481_v60 = vadd.f32 1.0, %v1318_v59 }
 0x734   :  { %1319 = vrcp.f32 %v481_v60 }
 0x741   :  { %v1320_v61 = vpop.eup %1319 }
 0x742   :  { %v485_v1 = vmul.f32 %v1320_v61, %v385_v48 }
 0x7a2   :  { %v488_v62 = vpop.permute.xlu1 %487 }
 0x7a3   :  { %v490_v63 = vmul.f32 %v1320_v61, %v488_v62 }
 0x7a5   :  { %492 = vrot.lane.b32.xlu0 %v490_v63, %s1481_s15  ;;  %v842_v63 = vld [vmem:[#allocation7 + $0x18] sm:$0xf] }
 0x817   :  { %v493_v2 = vpop.permute.xlu0 %492 }
 0x818   :  { %v495_v3 = vadd.f32 %v493_v2, %v485_v1 }
 0x81a   :  { %1321 = vtanh.f32 %v495_v3 }
 0x827   :  { %v1322_v4 = vpop.eup %1321 }
 0x828   :  { %498 = vrot.lane.b32.xlu1 %v1322_v4, %s1476_s1 }
 0x89a   :  { %v499_v5 = vpop.permute.xlu1 %498 }
 0x89b   :  { %v1625_v6 = vmul.f32 %v1320_v61, %v499_v5 }
 0x89d   :  { %514 = vrot.lane.b32.xlu0 %v1625_v6, %s1481_s15 }
 0x90f   :  { %v515_v7 = vpop.permute.xlu0 %514 }
 0x910   :  { %1234 = vmatmul.mubr.msk.f32.vlgmr.msra.gmra.mxu0 %vm168_vm2, %v515_v7 }
 0x911   :  { %1248 = vmatpush3.msra.mxu0 %v1564_v27  ;;  %1255 = vmatprep.mubr.msk.f32.mxu0 %vm1480_vm0, %v1479_v0 }
 0x912   :  { %1249 = vmatprep.subr.mxu0 %v1479_v0 }
 0x913   :  { %1250 = vmatpush3.msra.mxu0 %v1566_v28 }
 0x914   :  { %1251 = vmatprep.subr.mxu0 %v1479_v0 }
 0x915   :  { %1252 = vmatpush3.msra.mxu0 %v1571_v29 }
 0x916   :  { %1253 = vmatprep.subr.mxu0 %v1479_v0 }
 0x917   :  { %1254 = vmatpush3.msra.mxu0 %v1577_v30 }
 0x918   :  { %1269 = vmatprep.subr.mxu0 %v1479_v0 }
 0x9d0   :  { %v584_v9 = vpop.f32.mrf.mxu0 }
 0x9d1   :  { %v585_v10 = vadd.f32 %v584_v9, %v512_v8 }
 0x9d2   :  { %v1235_v11 = vpop.f32.mrf.mxu0 }
 0x9d3   :  { %1323 = vtanh.f32 %v585_v10  ;;  %v1133_v13 = vmul.f32 -1.442695, %v585_v10 }
 0x9d5   :  { %1325 = vpow2.f32 %v1133_v13 }
 0x9e0   :  { %v1324_v12 = vpop.eup %1323 }
 0x9e1   :  { %597 = vrot.lane.b32.xlu1 %v1324_v12, %s1476_s1 }
 0x9e2   :  { %v1326_v14 = vpop.eup %1325 }
 0x9e3   :  { %v591_v15 = vadd.f32 1.0, %v1326_v14 }
 0x9e5   :  { %1327 = vrcp.f32 %v591_v15 }
 0x9f2   :  { %v1328_v16 = vpop.eup %1327 }
 0x9f3   :  { %v595_v19 = vmul.f32 %v1328_v16, %v495_v3 }
 0xa53   :  { %v598_v17 = vpop.permute.xlu1 %597 }
 0xa54   :  { %v600_v18 = vmul.f32 %v1328_v16, %v598_v17 }
 0xa56   :  { %602 = vrot.lane.b32.xlu0 %v600_v18, %s1481_s15 }
 0xac8   :  { %v603_v20 = vpop.permute.xlu0 %602 }
 0xac9   :  { %v605_v21 = vadd.f32 %v603_v20, %v595_v19  ;;  %v952_v19 = vld [vmem:[#allocation7 + $0x1c] sm:$0xf] }
 0xacb   :  { %1329 = vtanh.f32 %v605_v21 }
 0xad8   :  { %v1330_v22 = vpop.eup %1329 }
 0xad9   :  { %608 = vrot.lane.b32.xlu1 %v1330_v22, %s1476_s1 }
 0xb4b   :  { %v609_v23 = vpop.permute.xlu1 %608 }
 0xb4c   :  { %v1643_v24 = vmul.f32 %v1328_v16, %v609_v23 }
 0xb4e   :  { %624 = vrot.lane.b32.xlu0 %v1643_v24, %s1481_s15 }
 0xbc0   :  { %v625_v25 = vpop.permute.xlu0 %624 }
 0xbc1   :  { %1245 = vmatmul.mubr.msk.f32.vlgmr.msra.gmra.mxu1 %vm168_vm2, %v625_v25  ;;  %v1126_v25 = vld [vmem:[%s1726_s4 + $0x1] ss:$0 sm:$0xff] }
 0xbc2   :  { %1259 = vmatpush3.msra.mxu1 %v1564_v27  ;;  %1266 = vmatprep.mubr.msk.f32.mxu1 %vm1480_vm0, %v1479_v0 }
 0xbc3   :  { %1260 = vmatprep.subr.mxu1 %v1479_v0 }
 0xbc4   :  { %1261 = vmatpush3.msra.mxu1 %v1566_v28 }
 0xbc5   :  { %1262 = vmatprep.subr.mxu1 %v1479_v0 }
 0xbc6   :  { %1263 = vmatpush3.msra.mxu1 %v1571_v29 }
 0xbc7   :  { %1264 = vmatprep.subr.mxu1 %v1479_v0 }
 0xbc8   :  { %1265 = vmatpush3.msra.mxu1 %v1577_v30 }
 0xc81   :  { %v694_v31 = vpop.f32.mrf.mxu1 }
 0xc82   :  { %v695_v32 = vadd.f32 %v694_v31, %v622_v26 }
 0xc83   :  { %v1246_v34 = vpop.f32.mrf.mxu1 }
 0xc84   :  { %1331 = vtanh.f32 %v695_v32  ;;  %v1135_v36 = vmul.f32 -1.442695, %v695_v32 }
 0xc86   :  { %1333 = vpow2.f32 %v1135_v36 }
 0xc91   :  { %v1332_v35 = vpop.eup %1331 }
 0xc92   :  { %707 = vrot.lane.b32.xlu1 %v1332_v35, %s1476_s1 }
 0xc93   :  { %v1334_v37 = vpop.eup %1333 }
 0xc94   :  { %v701_v38 = vadd.f32 1.0, %v1334_v37 }
 0xc96   :  { %1335 = vrcp.f32 %v701_v38 }
 0xca3   :  { %v1336_v39 = vpop.eup %1335 }
 0xca4   :  { %v705_v42 = vmul.f32 %v1336_v39, %v605_v21 }
 0xd04   :  { %v708_v40 = vpop.permute.xlu1 %707 }
 0xd05   :  { %v710_v41 = vmul.f32 %v1336_v39, %v708_v40 }
 0xd07   :  { %712 = vrot.lane.b32.xlu0 %v710_v41, %s1481_s15 }
 0xd79   :  { %v713_v43 = vpop.permute.xlu0 %712 }
 0xd7a   :  { %v715_v44 = vadd.f32 %v713_v43, %v705_v42 }
 0xd7c   :  { %1337 = vtanh.f32 %v715_v44 }
 0xd89   :  { %v1338_v45 = vpop.eup %1337 }
 0xd8a   :  { %718 = vrot.lane.b32.xlu1 %v1338_v45, %s1476_s1 }
 0xdfc   :  { %v719_v46 = vpop.permute.xlu1 %718 }
 0xdfd   :  { %v1660_v47 = vmul.f32 %v1336_v39, %v719_v46 }
 0xdff   :  { %734 = vrot.lane.b32.xlu0 %v1660_v47, %s1481_s15 }
 0xe71   :  { %v735_v48 = vpop.permute.xlu0 %734 }
 0xe72   :  { %1256 = vmatmul.mubr.msk.f32.vlgmr.msra.gmra.mxu0 %vm168_vm2, %v735_v48 }
 0xe73   :  { %1270 = vmatpush3.msra.mxu0 %v1564_v27  ;;  %1277 = vmatprep.mubr.msk.f32.mxu0 %vm1480_vm0, %v1479_v0 }
 0xe74   :  { %1271 = vmatprep.subr.mxu0 %v1479_v0 }
 0xe75   :  { %1272 = vmatpush3.msra.mxu0 %v1566_v28 }
 0xe76   :  { %1273 = vmatprep.subr.mxu0 %v1479_v0 }
 0xe77   :  { %1274 = vmatpush3.msra.mxu0 %v1571_v29 }
 0xe78   :  { %1275 = vmatprep.subr.mxu0 %v1479_v0 }
 0xe79   :  { %1276 = vmatpush3.msra.mxu0 %v1577_v30 }
 0xf32   :  { %v804_v50 = vpop.f32.mrf.mxu0 }
 0xf33   :  { %v805_v52 = vadd.f32 %v804_v50, %v732_v49 }
 0xf34   :  { %v1257_v53 = vpop.f32.mrf.mxu0 }
 0xf35   :  { %1339 = vtanh.f32 %v805_v52  ;;  %v1137_v54 = vmul.f32 -1.442695, %v805_v52 }
 0xf37   :  { %1341 = vpow2.f32 %v1137_v54 }
 0xf42   :  { %v1340_v27 = vpop.eup %1339 }
 0xf43   :  { %817 = vrot.lane.b32.xlu1 %v1340_v27, %s1476_s1 }
 0xf44   :  { %v1342_v55 = vpop.eup %1341 }
 0xf45   :  { %v811_v28 = vadd.f32 1.0, %v1342_v55 }
 0xf47   :  { %1343 = vrcp.f32 %v811_v28 }
 0xf54   :  { %v1344_v56 = vpop.eup %1343 }
 0xf55   :  { %v815_v0 = vmul.f32 %v1344_v56, %v715_v44 }
 0xfb5   :  { %v818_v57 = vpop.permute.xlu1 %817 }
 0xfb6   :  { %v820_v29 = vmul.f32 %v1344_v56, %v818_v57 }
 0xfb8   :  { %822 = vrot.lane.b32.xlu0 %v820_v29, %s1481_s15 }
0x102a   :  { %v823_v30 = vpop.permute.xlu0 %822 }
0x102b   :  { %v825_v58 = vadd.f32 %v823_v30, %v815_v0 }
0x102d   :  { %1345 = vtanh.f32 %v825_v58 }
0x103a   :  { %v1346_v59 = vpop.eup %1345 }
0x103b   :  { %828 = vrot.lane.b32.xlu1 %v1346_v59, %s1476_s1 }
0x10ad   :  { %v829_v60 = vpop.permute.xlu1 %828 }
0x10ae   :  { %v1677_v61 = vmul.f32 %v1344_v56, %v829_v60  ;;  %v1127_v60 = vld [vmem:[%s1726_s4 + $0x2] ss:$0 sm:$0xff]  ;;  %s1486_s4 = smov 5  }
0x10b0   :  { %844 = vrot.lane.b32.xlu0 %v1677_v61, %s1481_s15 }
0x1122   :  { %v845_v62 = vpop.permute.xlu0 %844 }
0x1123   :  { %1267 = vmatmul.mubr.msk.f32.vlgmr.msra.gmra.mxu1 %vm168_vm2, %v845_v62 }
0x11e3   :  { %v914_v1 = vpop.f32.mrf.mxu1 }
0x11e4   :  { %v915_v2 = vadd.f32 %v914_v1, %v842_v63 }
0x11e5   :  { %v1268_v3 = vpop.f32.mrf.mxu1 }
0x11e6   :  { %1347 = vtanh.f32 %v915_v2  ;;  %v1139_v5 = vmul.f32 -1.442695, %v915_v2 }
0x11e8   :  { %1349 = vpow2.f32 %v1139_v5 }
0x11f3   :  { %v1348_v4 = vpop.eup %1347 }
0x11f4   :  { %927 = vrot.lane.b32.xlu1 %v1348_v4, %s1476_s1 }
0x11f5   :  { %v1350_v7 = vpop.eup %1349 }
0x11f6   :  { %v921_v8 = vadd.f32 1.0, %v1350_v7 }
0x11f8   :  { %1351 = vrcp.f32 %v921_v8 }
0x1205   :  { %v1352_v9 = vpop.eup %1351 }
0x1206   :  { %v925_v12 = vmul.f32 %v1352_v9, %v825_v58 }
0x1266   :  { %v928_v10 = vpop.permute.xlu1 %927 }
0x1267   :  { %v930_v11 = vmul.f32 %v1352_v9, %v928_v10 }
0x1269   :  { %932 = vrot.lane.b32.xlu0 %v930_v11, %s1481_s15 }
0x12db   :  { %v933_v13 = vpop.permute.xlu0 %932 }
0x12dc   :  { %v935_v14 = vadd.f32 %v933_v13, %v925_v12 }
0x12de   :  { %1353 = vtanh.f32 %v935_v14 }
0x12eb   :  { %v1354_v15 = vpop.eup %1353 }
0x12ec   :  { %938 = vrot.lane.b32.xlu1 %v1354_v15, %s1476_s1 }
0x135e   :  { %v939_v16 = vpop.permute.xlu1 %938 }
0x135f   :  { %v941_v17 = vmul.f32 %v1352_v9, %v939_v16 }
0x1361   :  { %954 = vrot.lane.b32.xlu0 %v941_v17, %s1481_s15 }
0x13d3   :  { %v955_v18 = vpop.permute.xlu0 %954 }
0x13d4   :  { %1278 = vmatmul.mubr.msk.f32.vlgmr.msra.gmra.mxu0 %vm168_vm2, %v955_v18 }
0x1494   :  { %v1024_v20 = vpop.f32.mrf.mxu0 }
0x1495   :  { %v1025_v21 = vadd.f32 %v1024_v20, %v952_v19 }
0x1496   :  { %v1279_v22 = vpop.f32.mrf.mxu0 }
0x1497   :  { %1355 = vtanh.f32 %v1025_v21  ;;  %v1141_v26 = vmul.f32 -1.442695, %v1025_v21 }
0x1499   :  { %1357 = vpow2.f32 %v1141_v26 }
0x14a4   :  { %v1356_v23 = vpop.eup %1355 }
0x14a5   :  { %1037 = vrot.lane.b32.xlu1 %v1356_v23, %s1476_s1 }
0x14a6   :  { %v1358_v31 = vpop.eup %1357 }
0x14a7   :  { %v1031_v32 = vadd.f32 1.0, %v1358_v31 }
0x14a9   :  { %274 = vrot.lane.b32.xlu1 %v1126_v25, %s1482_s18  ;;  %1359 = vrcp.f32 %v1031_v32 }
0x14b6   :  { %v1360_v34 = vpop.eup %1359 }
0x14b7   :  { %v1035_v40 = vmul.f32 %v1360_v34, %v935_v14 }
0x1517   :  { %v1038_v35 = vpop.permute.xlu1 %1037 }
0x1518   :  { %v1040_v36 = vmul.f32 %v1360_v34, %v1038_v35 }
0x151a   :  { %1042 = vrot.lane.b32.xlu0 %v1040_v36, %s1481_s15 }
0x151b   :  { %v275_v37 = vpop.permute.xlu1 %274 }
0x151c   :  { %v277_v38 = vmul.f32 %v275_v37, %v1589_v33  ;;  %v392_v39 = vmul.f32 %v1607_v51, %v275_v37  ;;  %v612_v33 = vmul.f32 %v1643_v24, %v275_v37  ;;  %v942_v51 = vmul.f32 %v941_v17, %v275_v37 }
0x151d   :  { %v502_v49 = vmul.f32 %v1625_v6, %v275_v37  ;;  %v722_v50 = vmul.f32 %v1660_v47, %v275_v37  ;;  %v832_v52 = vmul.f32 %v1677_v61, %v275_v37 }
0x151e   :  { %279 = vrot.lane.b32.xlu1 %v277_v38, %s1481_s15 }
0x1522   :  { %394 = vrot.lane.b32.xlu1 %v392_v39, %s1481_s15 }
0x158c   :  { %v1043_v41 = vpop.permute.xlu0 %1042 }
0x158d   :  { %v1045_v42 = vadd.f32 %v1043_v41, %v1035_v40 }
0x158f   :  { %1361 = vtanh.f32 %v1045_v42 }
0x1590   :  { %v280_v43 = vpop.permute.xlu1 %279 }
0x1591   :  { %v283_v48 = vsel %vm282_vm3, %v280_v43, 0.0 }
0x1594   :  { %v395_v44 = vpop.permute.xlu1 %394 }
0x1595   :  { %v397_v45 = vsel %vm282_vm3, %v395_v44, 0.0 }
0x1596   :  { %398 = vadd.xlane.f32.xlu1 %v397_v45 }
0x159c   :  { %v1362_v46 = vpop.eup %1361 }
0x159d   :  { %1048 = vrot.lane.b32.xlu0 %v1362_v46, %s1476_s1 }
0x15a7   :  { %614 = vrot.lane.b32.xlu1 %v612_v33, %s1481_s15 }
0x15ab   :  { %944 = vrot.lane.b32.xlu1 %v942_v51, %s1481_s15 }
0x15bc   :  { %284 = vadd.xlane.f32.xlu0 %v283_v48 }
0x15d2   :  { %504 = vrot.lane.b32.xlu0 %v502_v49, %s1481_s15 }
0x15d6   :  { %724 = vrot.lane.b32.xlu0 %v722_v50, %s1481_s15 }
0x15da   :  { %834 = vrot.lane.b32.xlu0 %v832_v52, %s1481_s15 }
0x160f   :  { %v1049_v24 = vpop.permute.xlu0 %1048 }
0x1610   :  { %v1051_v53 = vmul.f32 %v1360_v34, %v1049_v24 }
0x1612   :  { %v1052_v27 = vmul.f32 %v1051_v53, %v275_v37 }
0x1614   :  { %1054 = vrot.lane.b32.xlu0 %v1052_v27, %s1481_s15 }
0x161f   :  { %v399_v54 = vpop.xlane.xlu1 %398 }
0x1620   :  { %v400_v61 = vadd.f32 %v1127_v60, %v399_v54 }
0x1623   :  { %v615_v55 = vpop.permute.xlu1 %614 }
0x1624   :  { %v617_v28 = vsel %vm282_vm3, %v615_v55, 0.0 }
0x1627   :  { %v945_v0 = vpop.permute.xlu1 %944 }
0x1628   :  { %v947_v58 = vsel %vm282_vm3, %v945_v0, 0.0 }
0x1633   :  { %618 = vadd.xlane.f32.xlu0 %v617_v28 }
0x1645   :  { %v285_v6 = vpop.xlane.xlu0 %284 }
0x1646   :  { %v290_v17 = vadd.f32 %v1127_v60, %v285_v6 }
0x1649   :  { %v505_v56 = vpop.permute.xlu0 %504 }
0x164a   :  { %v507_v47 = vsel %vm282_vm3, %v505_v56, 0.0 }
0x164b   :  { %508 = vadd.xlane.f32.xlu1 %v507_v47 }
0x164d   :  { %v725_v57 = vpop.permute.xlu0 %724 }
0x164e   :  { %v727_v29 = vsel %vm282_vm3, %v725_v57, 0.0 }
0x164f   :  { %728 = vadd.xlane.f32.xlu0 %v727_v29 }
0x1651   :  { %v835_v30 = vpop.permute.xlu0 %834 }
0x1652   :  { %v837_v59 = vsel %vm282_vm3, %v835_v30, 0.0 }
0x1653   :  { %948 = vadd.xlane.f32.xlu0 %v947_v58  ;;  %838 = vadd.xlane.f32.xlu1 %v837_v59 }
0x1669   :  { %1062 = vrot.lane.b32.xlu0 %v400_v61, %s1483_s21 }
0x1686   :  { %v1055_v62 = vpop.permute.xlu0 %1054 }
0x1687   :  { %v1057_v63 = vsel %vm282_vm3, %v1055_v62, 0.0 }
0x1688   :  { %1058 = vadd.xlane.f32.xlu1 %v1057_v63 }
0x16bc   :  { %v619_v1 = vpop.xlane.xlu0 %618 }
0x16bd   :  { %v620_v5 = vadd.f32 %v1127_v60, %v619_v1 }
0x16d4   :  { %v509_v2 = vpop.xlane.xlu1 %508 }
0x16d5   :  { %v510_v3 = vadd.f32 %v1127_v60, %v509_v2 }
0x16d7   :  { %1066 = vrot.lane.b32.xlu1 %v510_v3, %s1484_s22 }
0x16d8   :  { %v729_v4 = vpop.xlane.xlu0 %728 }
0x16d9   :  { %v730_v7 = vadd.f32 %v1127_v60, %v729_v4 }
0x16db   :  { %1070 = vrot.lane.b32.xlu1 %v620_v5, %s1485_s23  ;;  %1074 = vrot.lane.b32.xlu0 %v730_v7, %s1477_s8 }
0x16dc   :  { %v839_v8 = vpop.xlane.xlu1 %838  ;;  %v949_v9 = vpop.xlane.xlu0 %948 }
0x16dd   :  { %v840_v10 = vadd.f32 %v1127_v60, %v839_v8  ;;  %v950_v11 = vadd.f32 %v1127_v60, %v949_v9 }
0x16df   :  { %1078 = vrot.lane.b32.xlu1 %v840_v10, %s1486_s4  ;;  %1082 = vrot.lane.b32.xlu0 %v950_v11, %s1487_s24 }
0x16e0   :  { %v1063_v15 = vpop.permute.xlu0 %1062 }
0x16e1   :  { %v1090_v18 = vsel %vm1089_vm4, %v290_v17, %v1063_v15 }
0x1711   :  { %v1059_v12 = vpop.xlane.xlu1 %1058 }
0x1712   :  { %v1060_v13 = vadd.f32 %v1127_v60, %v1059_v12 }
0x1714   :  { %1086 = vrot.lane.b32.xlu1 %v1060_v13, %s1488_s25 }
0x1749   :  { %v1067_v14 = vpop.permute.xlu1 %1066 }
0x174a   :  { %v1092_v20 = vsel %vm1091_vm5, %v1090_v18, %v1067_v14 }
0x174d   :  { %v1071_v16 = vpop.permute.xlu1 %1070  ;;  %v1075_v19 = vpop.permute.xlu0 %1074 }
0x174e   :  { %v1094_v21 = vsel %vm1093_vm6, %v1092_v20, %v1071_v16 }
0x174f   :  { %v1096_v23 = vsel %vm1095_vm7, %v1094_v21, %v1075_v19 }
0x1751   :  { %v1079_v22 = vpop.permute.xlu1 %1078  ;;  %v1083_v26 = vpop.permute.xlu0 %1082 }
0x1752   :  { %v1098_v25 = vsel %vm1097_vm8, %v1096_v23, %v1079_v22 }
0x1753   :  { %v1100_v31 = vsel %vm1099_vm9, %v1098_v25, %v1083_v26 }
0x1786   :  { %v1087_v32 = vpop.permute.xlu1 %1086 }
0x1787   :  { %v1102_v34 = vsel %vm1101_vm10, %v1100_v31, %v1087_v32 }
0x1788   :  { %1104 = vst.msk [vmem:[#allocation10] sm:$0xf] %vm1103_vm11, %v1102_v34 }
0x1789   :  { %1454 = shalt.err (!%p1451_p10)
}
0x178a   :  { %1114 = dma.vmem_to_hbm [thread:$0]  %s1112_s27, 64, %s1727_s5, [#allocation4]  }
0x178b   :  { %1469 = dma.done.wait [#allocation4], 64  }
0x178c   :  { %1470 = vsyncadd [#allocation4], 4294967232 }
0x178d   :  { %1118 = vsyncpa [#allocation3], 1 }
0x178e   :  { %1119 = vsyncpa [#allocation6], 1 }
0x178f   :  { %1120 = vsyncpa [#allocation9], 1 }
0x1790   :  { %1121 = vsyncpa [#allocation4], 1 }

</bundles_post_ra>
